<compile_context>
chip_gen: v7x
topology: tpu7x:2x2x1
jax: 0.10.0
libtpu: 0.0.40
codegen_flags: <defaults>
</compile_context>

<pallas_src>
import jax
import jax.numpy as jnp
from jax.experimental import pallas as pl
from jax.experimental.pallas import tpu as pltpu

# Problem constants (match the PyTorch module + chosen small input size)
IN_CHANNELS = 3
OUT_CHANNELS = 16
KERNEL_SIZE = 3
BATCH = 2
H = W = 16
OH = H - KERNEL_SIZE + 1  # 14 (valid conv, stride 1)
OW = W - KERNEL_SIZE + 1  # 14
OHW = OH * OW             # 196 (lane axis of the kernel output)
KFLAT = IN_CHANNELS * KERNEL_SIZE * KERNEL_SIZE  # 27


def _mish_fast(v):
    # mish(v) = v * tanh(softplus(v)) = v * (u^2 - 1) / (u^2 + 1),  u = 1 + exp(v)
    # Clamp the exp argument: for v > 20 the ratio is exactly 1.0 in f32, so the
    # clamp is lossless and avoids inf/inf -> NaN.
    u = 1.0 + jnp.exp(jnp.minimum(v, 20.0))
    u2 = u * u
    return v * (u2 - 1.0) / (u2 + 1.0)


def conv_mish_mish_kernel(p_ref, w_ref, b_ref, o_ref):
    # p_ref: (N, KFLAT, OH*OW)   im2col patches, column-major spatial (lane-dense)
    # w_ref: (Cout, KFLAT)       flattened PyTorch weight (cin, kh, kw) minor order
    # b_ref: (Cout, 1)
    # o_ref: (N, Cout, OH*OW)    -> already NCHW order, last dim = 196 lanes
    w = w_ref[...]
    b = b_ref[...]
    for n in range(p_ref.shape[0]):  # unrolled over the (tiny) batch
        y = jnp.dot(w, p_ref[n], preferred_element_type=jnp.float32)  # (Cout, OHW)
        y = y + b
        y = _mish_fast(_mish_fast(y))
        o_ref[n] = y.astype(o_ref.dtype)


@jax.jit
def conv_mish_mish(x_nchw, weight, bias):
    """x_nchw: (N, Cin, H, W) f32; weight: (Cout, Cin, KH, KW); bias: (Cout,)."""
    n = x_nchw.shape[0]

    # im2col in the wrapper, straight from NCHW (no layout transposes):
    # p[n, ci*9 + kh*3 + kw, oh*OW + ow] = x[n, ci, oh+kh, ow+kw]
    slices = []
    for kh in range(KERNEL_SIZE):
        for kw in range(KERNEL_SIZE):
            slices.append(x_nchw[:, :, kh:kh + OH, kw:kw + OW])  # (N, Cin, OH, OW)
    p = jnp.stack(slices, axis=2)                 # (N, Cin, KH*KW, OH, OW)
    p = p.reshape(n, KFLAT, OHW)                  # (N, 27, 196)

    # (Cout, Cin, KH, KW) -> (Cout, KFLAT); same (cin, kh, kw) minor ordering as p.
    w_flat = weight.reshape(OUT_CHANNELS, KFLAT)
    b2d = bias.reshape(OUT_CHANNELS, 1)

    out_flat = pl.pallas_call(
        conv_mish_mish_kernel,
        out_shape=jax.ShapeDtypeStruct((n, OUT_CHANNELS, OHW), x_nchw.dtype),
        grid_spec=pltpu.PrefetchScalarGridSpec(
            num_scalar_prefetch=0,
            grid=(1,),  # whole problem (~55 KiB) fits in VMEM in one step
            in_specs=[
                pl.BlockSpec((n, KFLAT, OHW), lambda i: (0, 0, 0)),
                pl.BlockSpec((OUT_CHANNELS, KFLAT), lambda i: (0, 0)),
                pl.BlockSpec((OUT_CHANNELS, 1), lambda i: (0, 0)),
            ],
            out_specs=pl.BlockSpec((n, OUT_CHANNELS, OHW), lambda i: (0, 0, 0)),
        ),
        compiler_params=pltpu.CompilerParams(dimension_semantics=("arbitrary",)),
    )(p, w_flat, b2d)

    # Metadata-only reshape: (N, Cout, OH*OW) -> (N, Cout, OH, OW) == PyTorch NCHW.
    return out_flat.reshape(n, OUT_CHANNELS, OH, OW)


def _reference(x_nchw, weight, bias):
    # Pure-JAX reference: lax conv + double mish (canonical tanh(softplus) form).
    y = jax.lax.conv_general_dilated(
        x_nchw, weight, window_strides=(1, 1), padding="VALID",
        dimension_numbers=("NCHW", "OIHW", "NCHW"))
    y = y + bias.reshape(1, OUT_CHANNELS, 1, 1)

    def mish(v):
        return v * jnp.tanh(jnp.logaddexp(v, 0.0))

    return mish(mish(y))


if __name__ == "__main__":
    key = jax.random.PRNGKey(0)
    kx, kw_, kb = jax.random.split(key, 3)

    # Input: (N, Cin, H, W) like PyTorch NCHW.
    x = jax.random.normal(kx, (BATCH, IN_CHANNELS, H, W), dtype=jnp.float32)

    # Deterministic Conv2d-style init: U(-1/sqrt(fan_in), 1/sqrt(fan_in)).
    fan_in = IN_CHANNELS * KERNEL_SIZE * KERNEL_SIZE
    bound = 1.0 / (fan_in ** 0.5)
    weight = jax.random.uniform(
        kw_, (OUT_CHANNELS, IN_CHANNELS, KERNEL_SIZE, KERNEL_SIZE),
        minval=-bound, maxval=bound, dtype=jnp.float32)
    bias = jax.random.uniform(
        kb, (OUT_CHANNELS,), minval=-bound, maxval=bound, dtype=jnp.float32)

    out = jax.block_until_ready(conv_mish_mish(x, weight, bias))
    ref = jax.block_until_ready(_reference(x, weight, bias))

    assert out.shape == (BATCH, OUT_CHANNELS, OH, OW), out.shape
    assert jnp.allclose(out, ref, atol=1e-5, rtol=1e-5), float(jnp.max(jnp.abs(out - ref)))

    print("KERNEL_OK")
</pallas_src>

<mosaic_0001>
module attributes {stable_mosaic.version = 11 : i64} {
  func.func @conv_mish_mish_kernel(%arg0: i32, %arg1: memref<2x27x196xf32, #tpu.memory_space<vmem>>, %arg2: memref<16x27xf32, #tpu.memory_space<vmem>>, %arg3: memref<16x1xf32, #tpu.memory_space<vmem>>, %arg4: memref<2x16x196xf32, #tpu.memory_space<vmem>>) attributes {dimension_semantics = [#tpu.dimension_semantics<arbitrary>], iteration_bounds = array<i64: 1>, scalar_prefetch = 0 : i64, scratch_operands = 0 : i64, tpu.core_type = #tpu.core_type<tc>, window_params = [{pipeline_mode = #tpu.pipeline_mode<synchronous>, transform_indices = @transform_0, window_bounds = array<i64: 2, 27, 196>}, {pipeline_mode = #tpu.pipeline_mode<synchronous>, transform_indices = @transform_1, window_bounds = array<i64: 16, 27>}, {pipeline_mode = #tpu.pipeline_mode<synchronous>, transform_indices = @transform_2, window_bounds = array<i64: 16, 1>}, {pipeline_mode = #tpu.pipeline_mode<synchronous>, transform_indices = @transform_3, window_bounds = array<i64: 2, 16, 196>}]} {
    %c0 = arith.constant 0 : index
    %c0_0 = arith.constant 0 : index
    %0 = vector.load %arg2[%c0, %c0_0] : memref<16x27xf32, #tpu.memory_space<vmem>>, vector<16x27xf32>
    %c0_1 = arith.constant 0 : index
    %c0_2 = arith.constant 0 : index
    %1 = vector.load %arg3[%c0_1, %c0_2] : memref<16x1xf32, #tpu.memory_space<vmem>>, vector<16x1xf32>
    %c0_3 = arith.constant 0 : index
    %c0_4 = arith.constant 0 : index
    %c0_5 = arith.constant 0 : index
    %2 = vector.load %arg1[%c0_3, %c0_4, %c0_5] : memref<2x27x196xf32, #tpu.memory_space<vmem>>, vector<1x27x196xf32>
    %3 = vector.shape_cast %2 : vector<1x27x196xf32> to vector<27x196xf32>
    %cst = arith.constant dense<0.000000e+00> : vector<16x196xf32>
    %4 = tpu.matmul %0, %3, %cst {dimension_numbers = #tpu.dot_dimension_numbers<[1], [0], [0], [1], [0, 0, 1, 1], [], []>} : vector<16x27xf32>, vector<27x196xf32>, vector<16x196xf32> -> vector<16x196xf32>
    %5 = vector.broadcast %1 : vector<16x1xf32> to vector<16x196xf32>
    %6 = arith.addf %4, %5 : vector<16x196xf32>
    %cst_6 = arith.constant 2.000000e+01 : f32
    %7 = vector.broadcast %cst_6 : f32 to vector<16x196xf32>
    %8 = arith.minimumf %6, %7 : vector<16x196xf32>
    %9 = math.exp %8 : vector<16x196xf32>
    %cst_7 = arith.constant 1.000000e+00 : f32
    %10 = vector.broadcast %cst_7 : f32 to vector<16x196xf32>
    %11 = arith.addf %10, %9 : vector<16x196xf32>
    %12 = arith.mulf %11, %11 : vector<16x196xf32>
    %cst_8 = arith.constant 1.000000e+00 : f32
    %13 = vector.broadcast %cst_8 : f32 to vector<16x196xf32>
    %14 = arith.subf %12, %13 : vector<16x196xf32>
    %15 = arith.mulf %6, %14 : vector<16x196xf32>
    %cst_9 = arith.constant 1.000000e+00 : f32
    %16 = vector.broadcast %cst_9 : f32 to vector<16x196xf32>
    %17 = arith.addf %12, %16 : vector<16x196xf32>
    %18 = arith.divf %15, %17 : vector<16x196xf32>
    %cst_10 = arith.constant 2.000000e+01 : f32
    %19 = vector.broadcast %cst_10 : f32 to vector<16x196xf32>
    %20 = arith.minimumf %18, %19 : vector<16x196xf32>
    %21 = math.exp %20 : vector<16x196xf32>
    %cst_11 = arith.constant 1.000000e+00 : f32
    %22 = vector.broadcast %cst_11 : f32 to vector<16x196xf32>
    %23 = arith.addf %22, %21 : vector<16x196xf32>
    %24 = arith.mulf %23, %23 : vector<16x196xf32>
    %cst_12 = arith.constant 1.000000e+00 : f32
    %25 = vector.broadcast %cst_12 : f32 to vector<16x196xf32>
    %26 = arith.subf %24, %25 : vector<16x196xf32>
    %27 = arith.mulf %18, %26 : vector<16x196xf32>
    %cst_13 = arith.constant 1.000000e+00 : f32
    %28 = vector.broadcast %cst_13 : f32 to vector<16x196xf32>
    %29 = arith.addf %24, %28 : vector<16x196xf32>
    %30 = arith.divf %27, %29 : vector<16x196xf32>
    %c0_14 = arith.constant 0 : index
    %c0_15 = arith.constant 0 : index
    %c0_16 = arith.constant 0 : index
    %31 = vector.load %arg4[%c0_14, %c0_15, %c0_16] : memref<2x16x196xf32, #tpu.memory_space<vmem>>, vector<1x16x196xf32>
    %32 = vector.shape_cast %31 : vector<1x16x196xf32> to vector<16x196xf32>
    %33 = vector.shape_cast %30 : vector<16x196xf32> to vector<1x16x196xf32>
    tpu.vector_store %arg4[%c0_14, %c0_15, %c0_16], %33 {strides = array<i32>} : memref<2x16x196xf32, #tpu.memory_space<vmem>>, vector<1x16x196xf32>,
    %c1 = arith.constant 1 : index
    %c0_17 = arith.constant 0 : index
    %c0_18 = arith.constant 0 : index
    %34 = vector.load %arg1[%c1, %c0_17, %c0_18] : memref<2x27x196xf32, #tpu.memory_space<vmem>>, vector<1x27x196xf32>
    %35 = vector.shape_cast %34 : vector<1x27x196xf32> to vector<27x196xf32>
    %cst_19 = arith.constant dense<0.000000e+00> : vector<16x196xf32>
    %36 = tpu.matmul %0, %35, %cst_19 {dimension_numbers = #tpu.dot_dimension_numbers<[1], [0], [0], [1], [0, 0, 1, 1], [], []>} : vector<16x27xf32>, vector<27x196xf32>, vector<16x196xf32> -> vector<16x196xf32>
    %37 = vector.broadcast %1 : vector<16x1xf32> to vector<16x196xf32>
    %38 = arith.addf %36, %37 : vector<16x196xf32>
    %cst_20 = arith.constant 2.000000e+01 : f32
    %39 = vector.broadcast %cst_20 : f32 to vector<16x196xf32>
    %40 = arith.minimumf %38, %39 : vector<16x196xf32>
    %41 = math.exp %40 : vector<16x196xf32>
    %cst_21 = arith.constant 1.000000e+00 : f32
    %42 = vector.broadcast %cst_21 : f32 to vector<16x196xf32>
    %43 = arith.addf %42, %41 : vector<16x196xf32>
    %44 = arith.mulf %43, %43 : vector<16x196xf32>
    %cst_22 = arith.constant 1.000000e+00 : f32
    %45 = vector.broadcast %cst_22 : f32 to vector<16x196xf32>
    %46 = arith.subf %44, %45 : vector<16x196xf32>
    %47 = arith.mulf %38, %46 : vector<16x196xf32>
    %cst_23 = arith.constant 1.000000e+00 : f32
    %48 = vector.broadcast %cst_23 : f32 to vector<16x196xf32>
    %49 = arith.addf %44, %48 : vector<16x196xf32>
    %50 = arith.divf %47, %49 : vector<16x196xf32>
    %cst_24 = arith.constant 2.000000e+01 : f32
    %51 = vector.broadcast %cst_24 : f32 to vector<16x196xf32>
    %52 = arith.minimumf %50, %51 : vector<16x196xf32>
    %53 = math.exp %52 : vector<16x196xf32>
    %cst_25 = arith.constant 1.000000e+00 : f32
    %54 = vector.broadcast %cst_25 : f32 to vector<16x196xf32>
    %55 = arith.addf %54, %53 : vector<16x196xf32>
    %56 = arith.mulf %55, %55 : vector<16x196xf32>
    %cst_26 = arith.constant 1.000000e+00 : f32
    %57 = vector.broadcast %cst_26 : f32 to vector<16x196xf32>
    %58 = arith.subf %56, %57 : vector<16x196xf32>
    %59 = arith.mulf %50, %58 : vector<16x196xf32>
    %cst_27 = arith.constant 1.000000e+00 : f32
    %60 = vector.broadcast %cst_27 : f32 to vector<16x196xf32>
    %61 = arith.addf %56, %60 : vector<16x196xf32>
    %62 = arith.divf %59, %61 : vector<16x196xf32>
    %c1_28 = arith.constant 1 : index
    %c0_29 = arith.constant 0 : index
    %c0_30 = arith.constant 0 : index
    %63 = vector.load %arg4[%c1_28, %c0_29, %c0_30] : memref<2x16x196xf32, #tpu.memory_space<vmem>>, vector<1x16x196xf32>
    %64 = vector.shape_cast %63 : vector<1x16x196xf32> to vector<16x196xf32>
    %65 = vector.shape_cast %62 : vector<16x196xf32> to vector<1x16x196xf32>
    tpu.vector_store %arg4[%c1_28, %c0_29, %c0_30], %65 {strides = array<i32>} : memref<2x16x196xf32, #tpu.memory_space<vmem>>, vector<1x16x196xf32>,
    return
  }
  func.func @transform_0(%arg0: i32) -> (i32, i32, i32) {
    %c0_i32 = arith.constant 0 : i32
    %c0_i32_0 = arith.constant 0 : i32
    %c0_i32_1 = arith.constant 0 : i32
    %c0_i32_2 = arith.constant 0 : i32
    return %c0_i32, %c0_i32_0, %c0_i32_1 : i32, i32, i32
  }
  func.func @transform_1(%arg0: i32) -> (i32, i32) {
    %c0_i32 = arith.constant 0 : i32
    %c0_i32_0 = arith.constant 0 : i32
    %c0_i32_1 = arith.constant 0 : i32
    return %c0_i32, %c0_i32_0 : i32, i32
  }
  func.func @transform_2(%arg0: i32) -> (i32, i32) {
    %c0_i32 = arith.constant 0 : i32
    %c0_i32_0 = arith.constant 0 : i32
    %c0_i32_1 = arith.constant 0 : i32
    return %c0_i32, %c0_i32_0 : i32, i32
  }
  func.func @transform_3(%arg0: i32) -> (i32, i32, i32) {
    %c0_i32 = arith.constant 0 : i32
    %c0_i32_0 = arith.constant 0 : i32
    %c0_i32_1 = arith.constant 0 : i32
    %c0_i32_2 = arith.constant 0 : i32
    return %c0_i32, %c0_i32_0, %c0_i32_1 : i32, i32, i32
  }
}

</mosaic_0001>

<bundles_post_ra>
// kernel: conv_mish_mish.1
= control target key start
LH: loop header
LB: loop body
LE: loop exit
PB: predicated region body
PF: predicated region fallthrough
CT: control target
= control target key end

     0   :  { %vm43_vm0 = vcmask 1042432   ;;  %v517_v3 = vmov 0.0   ;;  %v518_v8 = vmov 0   ;;  %vm519_vm1 = vmmov 1   ;;  %s705_s0 = inlined_call_operand.vmem [shape: f32[2,27,196], index: 0, kind: input, shape index: {}]   ;;  %s706_s2 = inlined_call_operand.vmem [shape: f32[16,1], index: 2, kind: input, shape index: {}]   ;;  %s707_s1 = inlined_call_operand.vmem [shape: f32[16,27], index: 1, kind: input, shape index: {}]   ;;  %s708_s3 = inlined_call_operand.vmem [shape: f32[2,16,196], index: 3, kind: output, shape index: {}]  }
   0x1   :  { %v19_v0 = vld [vmem:[%s705_s0 + $0x8] sm:$0xff]  ;;  %v21_v1 = vld [vmem:[%s705_s0 + $0x18] sm:$0xff]  ;;  %114 = vmatprep.mubr.f32.mxu0 %v517_v3  ;;  %291 = vmatprep.mubr.f32.mxu1 %v517_v3  ;;  %v18_v6 = vld [vmem:[%s705_s0] sm:$0xff]  ;;  %vm36_vm3 = vcmask 220160   ;;  %vm208_vm4 = vcmask 556032  }
   0x2   :  { %v406_v2 = vld [vmem:[%s705_s0 + $0x48] sm:$0xff]  ;;  %v429_v4 = vpack.c.bf16 %v21_v1, %v19_v0  ;;  %v408_v5 = vld [vmem:[%s705_s0 + $0x58] sm:$0xff]  ;;  %v20_v7 = vld [vmem:[%s705_s0 + $0x10] sm:$0xff]  ;;  %452 = vset.pattern.permute.xlu0 %v518_v8 }
   0x3   :  { %v439_v9 = vpack.c.bf16 %v408_v5, %v406_v2  ;;  %v431_v10 = vpack.c.bf16 %v20_v7, %v18_v6  ;;  %v405_v11 = vld [vmem:[%s705_s0 + $0x40] sm:$0xff]  ;;  %v407_v12 = vld [vmem:[%s705_s0 + $0x50] sm:$0xff]  ;;  %v23_v13 = vld [vmem:[%s705_s0 + $0x28] sm:$0xff] }
   0x4   :  { %430 = vmatprep.subr.bf16.mxu0 %v429_v4  ;;  %v441_v14 = vpack.c.bf16 %v407_v12, %v405_v11  ;;  %v25_v15 = vld [vmem:[%s705_s0 + $0x38] sm:$0x7]  ;;  %vm571_vm2 = vmpackc.low %vm43_vm0, %vm519_vm1  ;;  %v410_v17 = vld [vmem:[%s705_s0 + $0x68] sm:$0xff] }
   0x5   :  { %440 = vmatprep.subr.bf16.mxu1 %v439_v9  ;;  %432 = vmatpush1.bf16.msra.mxu0 %v431_v10  ;;  %v433_v18 = vpack.c.bf16 %v25_v15, %v23_v13  ;;  %v412_v19 = vld [vmem:[%s705_s0 + $0x78] sm:$0x7]  ;;  %v22_v20 = vld [vmem:[%s705_s0 + $0x20] sm:$0xff]  ;;  %v24_v21 = vld [vmem:[%s705_s0 + $0x30] sm:$0x7] }
   0x6   :  { %442 = vmatpush1.bf16.msra.mxu1 %v441_v14  ;;  %v443_v22 = vpack.c.bf16 %v412_v19, %v410_v17  ;;  %v436_v23 = vpack.c.bf16 %v24_v21, %v22_v20  ;;  %v409_v24 = vld [vmem:[%s705_s0 + $0x60] sm:$0xff]  ;;  %v411_v25 = vld [vmem:[%s705_s0 + $0x70] sm:$0x7]  ;;  %v17_v29 = vld [vmem:[%s706_s2 + $0x8] sm:$0xff] }
   0x7   :  { %435 = vmatprep.subr.msk.bf16.mxu0 %vm571_vm2, %v433_v18  ;;  %v446_v26 = vpack.c.bf16 %v411_v25, %v409_v24  ;;  %v16_v27 = vld [vmem:[%s706_s2] sm:$0xff]  ;;  %v15_v30 = vld [vmem:[%s707_s1 + $0x8] sm:$0xff] }
   0x8   :  { %445 = vmatprep.subr.msk.bf16.mxu1 %vm571_vm2, %v443_v22  ;;  %28 = vperm.xlu0 %452, %v16_v27   ;;  %v14_v28 = vld [vmem:[%s707_s1] sm:$0xff] }
   0x9   :  { %438 = vmatpush1.bf16.msk.msra.mxu0 %vm571_vm2, %v436_v23 }
   0xa   :  { %448 = vmatpush1.bf16.msk.msra.mxu1 %vm571_vm2, %v446_v26 }
   0xc   :  { %395 = vmatmul.mubr.msk.f32.vlgmr.msra.gmra.mrb[0].mxu0 %vm36_vm3, %v14_v28  ;;  %33 = vperm.xlu0 %452, %v17_v29  }
   0xd   :  { %415 = vmatmul.mubr.msk.f32.vlgmr.msra.gmra.mrb[0].mxu1 %vm36_vm3, %v14_v28  ;;  %120 = vmatprep.mubr.f32.mxu0 %v517_v3 }
   0xe   :  { %297 = vmatprep.mubr.f32.mxu1 %v517_v3 }
  0x10   :  { %396 = vmatmul.mubr.msk.f32.gmra.mrb[2].mxu0 %vm36_vm3, %v15_v30 }
  0x11   :  { %416 = vmatmul.mubr.msk.f32.gmra.mrb[2].mxu1 %vm36_vm3, %v15_v30 }
  0x87   :  { %v29_v31 = vpop.permute.xlu0 %28 }
  0x8b   :  { %v34_v42 = vpop.permute.xlu0 %33 }
  0xdf   :  { %v116_v32 = vpop.f32.mrb[0].mxu0 }
  0xe0   :  { %v613_v33 = vadd.f32 %v116_v32, %v29_v31  ;;  %v293_v34 = vpop.f32.mrb[0].mxu1  ;;  %v118_v35 = vpop.f32.mrb[1].mxu0 }
  0xe1   :  { %v615_v36 = vadd.f32 %v293_v34, %v29_v31  ;;  %v617_v37 = vadd.f32 %v118_v35, %v29_v31  ;;  %v295_v38 = vpop.f32.mrb[1].mxu1 }
  0xe2   :  { %v127_v39 = vmin.f32 %v613_v33, 20.0  ;;  %v620_v40 = vadd.f32 %v295_v38, %v29_v31 }
  0xe3   :  { %v304_v41 = vmin.f32 %v615_v36, 20.0  ;;  %v128_v43 = vmin.f32 %v617_v37, 20.0  ;;  %v122_v44 = vpop.f32.mrb[2].mxu0 }
  0xe4   :  { %v131_v45 = vmul.f32 1.442695, %v127_v39  ;;  %v305_v46 = vmin.f32 %v620_v40, 20.0  ;;  %v625_v47 = vadd.f32 %v122_v44, %v34_v42  ;;  %v299_v48 = vpop.f32.mrb[2].mxu1  ;;  %v124_v49 = vpop.f32.mrb[3].mxu0 }
  0xe5   :  { %v308_v50 = vmul.f32 1.442695, %v304_v41  ;;  %v133_v51 = vmul.f32 1.442695, %v128_v43  ;;  %v627_v52 = vadd.f32 %v299_v48, %v34_v42  ;;  %v629_v53 = vadd.f32 %v124_v49, %v34_v42  ;;  %v301_v54 = vpop.f32.mrb[3].mxu1 }
  0xe6   :  { %453 = vpow2.f32 %v131_v45  ;;  %v310_v55 = vmul.f32 1.442695, %v305_v46  ;;  %v129_v56 = vmin.f32 %v625_v47, 20.0  ;;  %v632_v57 = vadd.f32 %v301_v54, %v34_v42 }
  0xe7   :  { %455 = vpow2.f32 %v308_v50  ;;  %v306_v58 = vmin.f32 %v627_v52, 20.0  ;;  %v130_v59 = vmin.f32 %v629_v53, 20.0 }
  0xe8   :  { %457 = vpow2.f32 %v133_v51  ;;  %v135_v60 = vmul.f32 1.442695, %v129_v56  ;;  %v307_v61 = vmin.f32 %v632_v57, 20.0 }
  0xe9   :  { %459 = vpow2.f32 %v310_v55  ;;  %v312_v62 = vmul.f32 1.442695, %v306_v58  ;;  %v137_v63 = vmul.f32 1.442695, %v130_v59 }
  0xea   :  { %461 = vpow2.f32 %v135_v60  ;;  %v314_v0 = vmul.f32 1.442695, %v307_v61 }
  0xeb   :  { %463 = vpow2.f32 %v312_v62 }
  0xec   :  { %465 = vpow2.f32 %v137_v63 }
  0xed   :  { %467 = vpow2.f32 %v314_v0 }
  0xf0   :  { %v454_v1 = vpop.eup %453 }
  0xf1   :  { %v456_v2 = vpop.eup %455  ;;  %v139_v3 = vadd.f32 1.0, %v454_v1 }
  0xf2   :  { %v458_v4 = vpop.eup %457  ;;  %v316_v5 = vadd.f32 1.0, %v456_v2 }
  0xf3   :  { %v460_v6 = vpop.eup %459  ;;  %v143_v7 = vmul.f32 %v139_v3, %v139_v3  ;;  %v140_v8 = vadd.f32 1.0, %v458_v4 }
  0xf4   :  { %v462_v9 = vpop.eup %461  ;;  %v320_v10 = vmul.f32 %v316_v5, %v316_v5  ;;  %v317_v11 = vadd.f32 1.0, %v460_v6 }
  0xf5   :  { %v464_v12 = vpop.eup %463  ;;  %v155_v13 = vadd.f32 1.0, %v143_v7  ;;  %v144_v14 = vmul.f32 %v140_v8, %v140_v8  ;;  %v141_v15 = vadd.f32 1.0, %v462_v9  ;;  %v397_v29 = vadd.f32 -1.0, %v143_v7 }
  0xf6   :  { %v466_v16 = vpop.eup %465  ;;  %v332_v17 = vadd.f32 1.0, %v320_v10  ;;  %v321_v18 = vmul.f32 %v317_v11, %v317_v11  ;;  %v318_v19 = vadd.f32 1.0, %v464_v12  ;;  %v417_v32 = vadd.f32 -1.0, %v320_v10 }
  0xf7   :  { %v468_v20 = vpop.eup %467  ;;  %469 = vrcp.f32 %v155_v13  ;;  %v156_v21 = vadd.f32 1.0, %v144_v14  ;;  %v145_v23 = vmul.f32 %v141_v15, %v141_v15  ;;  %v142_v25 = vadd.f32 1.0, %v466_v16 }
  0xf8   :  { %471 = vrcp.f32 %v332_v17  ;;  %v333_v22 = vadd.f32 1.0, %v321_v18  ;;  %v322_v24 = vmul.f32 %v318_v19, %v318_v19  ;;  %v319_v26 = vadd.f32 1.0, %v468_v20 }
  0xf9   :  { %473 = vrcp.f32 %v156_v21  ;;  %v157_v27 = vadd.f32 1.0, %v145_v23  ;;  %v146_v30 = vmul.f32 %v142_v25, %v142_v25  ;;  %v398_v34 = vadd.f32 -1.0, %v144_v14 }
  0xfa   :  { %475 = vrcp.f32 %v333_v22  ;;  %v334_v28 = vadd.f32 1.0, %v322_v24  ;;  %v323_v31 = vmul.f32 %v319_v26, %v319_v26  ;;  %v418_v38 = vadd.f32 -1.0, %v321_v18 }
  0xfb   :  { %477 = vrcp.f32 %v157_v27  ;;  %v158_v35 = vadd.f32 1.0, %v146_v30  ;;  %v151_v41 = vmul.f32 %v397_v29, %v613_v33  ;;  %v328_v43 = vmul.f32 %v417_v32, %v615_v36 }
  0xfc   :  { %479 = vrcp.f32 %v334_v28  ;;  %v335_v39 = vadd.f32 1.0, %v323_v31  ;;  %v152_v46 = vmul.f32 %v398_v34, %v617_v37  ;;  %v399_v48 = vadd.f32 -1.0, %v145_v23 }
  0xfd   :  { %481 = vrcp.f32 %v158_v35  ;;  %v329_v51 = vmul.f32 %v418_v38, %v620_v40  ;;  %v419_v54 = vadd.f32 -1.0, %v322_v24  ;;  %v400_v59 = vadd.f32 -1.0, %v146_v30 }
  0xfe   :  { %483 = vrcp.f32 %v335_v39  ;;  %v153_v61 = vmul.f32 %v399_v48, %v625_v47  ;;  %v420_v62 = vadd.f32 -1.0, %v323_v31 }
  0xff   :  { %v330_v1 = vmul.f32 %v419_v54, %v627_v52  ;;  %v154_v7 = vmul.f32 %v400_v59, %v629_v53 }
 0x100   :  { %v331_v9 = vmul.f32 %v420_v62, %v632_v57 }
 0x101   :  { %v470_v42 = vpop.eup %469 }
 0x102   :  { %v472_v44 = vpop.eup %471  ;;  %v639_v45 = vmul.f32 %v470_v42, %v151_v41 }
 0x103   :  { %v474_v49 = vpop.eup %473  ;;  %v642_v50 = vmul.f32 %v472_v44, %v328_v43 }
 0x104   :  { %v476_v55 = vpop.eup %475  ;;  %v167_v33 = vmin.f32 %v639_v45, 20.0  ;;  %v646_v56 = vmul.f32 %v474_v49, %v152_v46 }
 0x105   :  { %v344_v36 = vmin.f32 %v642_v50, 20.0  ;;  %v649_v58 = vmul.f32 %v476_v55, %v329_v51  ;;  %v478_v63 = vpop.eup %477 }
 0x106   :  { %v171_v60 = vmul.f32 1.442695, %v167_v33  ;;  %v168_v37 = vmin.f32 %v646_v56, 20.0  ;;  %v480_v2 = vpop.eup %479  ;;  %v655_v4 = vmul.f32 %v478_v63, %v153_v61 }
 0x107   :  { %v348_v0 = vmul.f32 1.442695, %v344_v36  ;;  %v345_v40 = vmin.f32 %v649_v58, 20.0  ;;  %v657_v6 = vmul.f32 %v480_v2, %v330_v1  ;;  %v482_v8 = vpop.eup %481 }
 0x108   :  { %485 = vpow2.f32 %v171_v60  ;;  %v173_v3 = vmul.f32 1.442695, %v168_v37  ;;  %v169_v47 = vmin.f32 %v655_v4, 20.0  ;;  %v484_v10 = vpop.eup %483  ;;  %v663_v11 = vmul.f32 %v482_v8, %v154_v7 }
 0x109   :  { %487 = vpow2.f32 %v348_v0  ;;  %v350_v5 = vmul.f32 1.442695, %v345_v40  ;;  %v346_v52 = vmin.f32 %v657_v6, 20.0  ;;  %v665_v13 = vmul.f32 %v484_v10, %v331_v9 }
 0x10a   :  { %489 = vpow2.f32 %v173_v3  ;;  %v175_v12 = vmul.f32 1.442695, %v169_v47  ;;  %v170_v15 = vmin.f32 %v663_v11, 20.0 }
 0x10b   :  { %491 = vpow2.f32 %v350_v5  ;;  %v352_v14 = vmul.f32 1.442695, %v346_v52  ;;  %v347_v53 = vmin.f32 %v665_v13, 20.0 }
 0x10c   :  { %493 = vpow2.f32 %v175_v12  ;;  %v177_v16 = vmul.f32 1.442695, %v170_v15 }
 0x10d   :  { %495 = vpow2.f32 %v352_v14  ;;  %v354_v17 = vmul.f32 1.442695, %v347_v53 }
 0x10e   :  { %497 = vpow2.f32 %v177_v16 }
 0x10f   :  { %499 = vpow2.f32 %v354_v17 }
 0x112   :  { %v486_v57 = vpop.eup %485 }
 0x113   :  { %v488_v18 = vpop.eup %487  ;;  %v179_v19 = vadd.f32 1.0, %v486_v57 }
 0x114   :  { %v490_v20 = vpop.eup %489  ;;  %v356_v21 = vadd.f32 1.0, %v488_v18 }
 0x115   :  { %v492_v22 = vpop.eup %491  ;;  %v183_v23 = vmul.f32 %v179_v19, %v179_v19  ;;  %v180_v24 = vadd.f32 1.0, %v490_v20 }
 0x116   :  { %v360_v25 = vmul.f32 %v356_v21, %v356_v21  ;;  %v357_v26 = vadd.f32 1.0, %v492_v22  ;;  %v494_v29 = vpop.eup %493 }
 0x117   :  { %v195_v27 = vadd.f32 1.0, %v183_v23  ;;  %v184_v28 = vmul.f32 %v180_v24, %v180_v24  ;;  %v496_v32 = vpop.eup %495  ;;  %v181_v39 = vadd.f32 1.0, %v494_v29  ;;  %v401_v49 = vadd.f32 -1.0, %v183_v23 }
 0x118   :  { %v372_v30 = vadd.f32 1.0, %v360_v25  ;;  %v361_v31 = vmul.f32 %v357_v26, %v357_v26  ;;  %v498_v38 = vpop.eup %497  ;;  %v358_v41 = vadd.f32 1.0, %v496_v32  ;;  %v421_v54 = vadd.f32 -1.0, %v360_v25 }
 0x119   :  { %501 = vrcp.f32 %v195_v27  ;;  %v196_v34 = vadd.f32 1.0, %v184_v28  ;;  %v500_v42 = vpop.eup %499  ;;  %v182_v43 = vadd.f32 1.0, %v498_v38  ;;  %v185_v44 = vmul.f32 %v181_v39, %v181_v39 }
 0x11a   :  { %503 = vrcp.f32 %v372_v30  ;;  %v373_v35 = vadd.f32 1.0, %v361_v31  ;;  %v362_v46 = vmul.f32 %v358_v41, %v358_v41  ;;  %v359_v48 = vadd.f32 1.0, %v500_v42 }
 0x11b   :  { %505 = vrcp.f32 %v196_v34  ;;  %v186_v51 = vmul.f32 %v182_v43, %v182_v43  ;;  %v197_v55 = vadd.f32 1.0, %v185_v44  ;;  %v402_v36 = vadd.f32 -1.0, %v184_v28 }
 0x11c   :  { %507 = vrcp.f32 %v373_v35  ;;  %v374_v33 = vadd.f32 1.0, %v362_v46  ;;  %v363_v60 = vmul.f32 %v359_v48, %v359_v48  ;;  %v422_v37 = vadd.f32 -1.0, %v361_v31 }
 0x11d   :  { %v198_v59 = vadd.f32 1.0, %v186_v51  ;;  %509 = vrcp.f32 %v197_v55  ;;  %v191_v61 = vmul.f32 %v401_v49, %v639_v45  ;;  %v368_v0 = vmul.f32 %v421_v54, %v642_v50 }
 0x11e   :  { %511 = vrcp.f32 %v374_v33  ;;  %v375_v62 = vadd.f32 1.0, %v363_v60  ;;  %v192_v2 = vmul.f32 %v402_v36, %v646_v56  ;;  %v369_v7 = vmul.f32 %v422_v37, %v649_v58 }
 0x11f   :  { %513 = vrcp.f32 %v198_v59  ;;  %v403_v47 = vadd.f32 -1.0, %v185_v44  ;;  %v423_v9 = vadd.f32 -1.0, %v362_v46  ;;  %v404_v56 = vadd.f32 -1.0, %v186_v51 }
 0x120   :  { %515 = vrcp.f32 %v375_v62  ;;  %v424_v58 = vadd.f32 -1.0, %v363_v60 }
 0x121   :  { %v193_v10 = vmul.f32 %v403_v47, %v655_v4  ;;  %v370_v12 = vmul.f32 %v423_v9, %v657_v6  ;;  %v194_v53 = vmul.f32 %v404_v56, %v663_v11 }
 0x122   :  { %v371_v57 = vmul.f32 %v424_v58, %v665_v13 }
 0x123   :  { %v502_v63 = vpop.eup %501 }
 0x124   :  { %v504_v40 = vpop.eup %503  ;;  %v200_v1 = vmul.f32 %v502_v63, %v191_v61 }
 0x125   :  { %v506_v3 = vpop.eup %505  ;;  %v377_v5 = vmul.f32 %v504_v40, %v368_v0 }
 0x126   :  { %v508_v8 = vpop.eup %507  ;;  %207 = vst [vmem:[%s708_s3] sm:$0xff] %v200_v1  ;;  %v202_v45 = vmul.f32 %v506_v3, %v192_v2 }
 0x127   :  { %425 = vst [vmem:[%s708_s3 + $0x20] sm:$0xff] %v377_v5  ;;  %v379_v50 = vmul.f32 %v508_v8, %v369_v7  ;;  %v510_v52 = vpop.eup %509 }
 0x128   :  { %209 = vst.msk [vmem:[%s708_s3 + $0x8] sm:$0xff] %vm208_vm4, %v202_v45  ;;  %v512_v14 = vpop.eup %511  ;;  %v204_v15 = vmul.f32 %v510_v52, %v193_v10 }
 0x129   :  { %426 = vst.msk [vmem:[%s708_s3 + $0x28] sm:$0xff] %vm208_vm4, %v379_v50  ;;  %v514_v16 = vpop.eup %513  ;;  %v381_v17 = vmul.f32 %v512_v14, %v370_v12 }
 0x12a   :  { %v516_v18 = vpop.eup %515  ;;  %210 = vst [vmem:[%s708_s3 + $0x10] sm:$0xff] %v204_v15  ;;  %v206_v19 = vmul.f32 %v514_v16, %v194_v53 }
 0x12b   :  { %427 = vst [vmem:[%s708_s3 + $0x30] sm:$0xff] %v381_v17  ;;  %v383_v4 = vmul.f32 %v516_v18, %v371_v57 }
 0x12c   :  { %211 = vst.msk [vmem:[%s708_s3 + $0x18] sm:$0xff] %vm208_vm4, %v206_v19 }
 0x12d   :  { %428 = vst.msk [vmem:[%s708_s3 + $0x38] sm:$0xff] %vm208_vm4, %v383_v4 }

</bundles_post_ra>
